<compile_context>
chip_gen: v7x
topology: tpu7x:2x2x1
jax: 0.10.0
libtpu: 0.0.40
codegen_flags: <defaults>
</compile_context>

<pallas_src>
import functools

import jax
import jax.numpy as jnp
from jax.experimental import pallas as pl
from jax.experimental.pallas import tpu as pltpu

_LANE = 128          # lane width: padded hidden / action dims
_BIAS_PAD_ROWS = 8   # sublane-aligned extra rows that hold the bias row


def _round_up(n, m):
    return ((n + m - 1) // m) * m


# ----------------------------------------------------------------------------
# Kernel: whole MLP (3 matmuls + 2 ReLUs) on one batch tile.
# ----------------------------------------------------------------------------
def _dqn_kernel(x_ref, w1_ref, w23_ref, out_ref, *, bias_row1, hpad):
    # x_ref:   (TB, F)            bf16, F = true feature count (no lane pad)
    # w1_ref:  (bias_row1+8, 128) bf16, W1 in rows [:F], b1 in row bias_row1
    # w23_ref: (2, hpad+8, 128)   bf16, Wl in rows [:hpad], bl in row hpad
    x = x_ref[...]

    # fc layer 1 + ReLU (rows F..bias_row1-1 of w1 are zero -> inert)
    h = jnp.dot(x, w1_ref[:bias_row1, :], preferred_element_type=jnp.float32)
    h = jnp.maximum(h + w1_ref[bias_row1:bias_row1 + 1, :], 0.0)

    # fc layer 2 + ReLU
    h = h.astype(w23_ref.dtype)
    h = jnp.dot(h, w23_ref[0, :hpad, :], preferred_element_type=jnp.float32)
    h = jnp.maximum(h + w23_ref[0, hpad:hpad + 1, :], 0.0)

    # value head (no activation) -> lane-dense (TB, 128) unmasked store
    h = h.astype(w23_ref.dtype)
    q = jnp.dot(h, w23_ref[1, :hpad, :], preferred_element_type=jnp.float32)
    out_ref[...] = (q + w23_ref[1, hpad:hpad + 1, :]).astype(out_ref.dtype)


# ----------------------------------------------------------------------------
# Parameter handling
# ----------------------------------------------------------------------------
def init_params(key, nr_input_features, nr_actions, nr_hidden_units=32):
    """nn.Linear-style uniform(-1/sqrt(fan_in), 1/sqrt(fan_in)) init.
    Weights stored as (in_features, out_features) for x @ W."""
    ks = jax.random.split(key, 6)

    def linear(kw, kb, fan_in, fan_out):
        bound = 1.0 / jnp.sqrt(jnp.float32(fan_in))
        w = jax.random.uniform(kw, (fan_in, fan_out), jnp.float32, -bound, bound)
        b = jax.random.uniform(kb, (fan_out,), jnp.float32, -bound, bound)
        return w, b

    w1, b1 = linear(ks[0], ks[1], nr_input_features, nr_hidden_units)
    w2, b2 = linear(ks[2], ks[3], nr_hidden_units, nr_hidden_units)
    w3, b3 = linear(ks[4], ks[5], nr_hidden_units, nr_actions)
    return (w1, b1, w2, b2, w3, b3)


def pack_params(params, dtype=jnp.bfloat16):
    """Pack parameters into two compact zero-padded slabs:
      slab1  : (round_up(F,8)+8, 128)  W1 in rows [:F], b1 in row round_up(F,8)
      slab23 : (2, 128+8, 128)         W2/W3 in rows [:32], b2/b3 in row 128
    Zero padding keeps numerics exact (padded lanes stay 0 through ReLU)."""
    w1, b1, w2, b2, w3, b3 = params
    F, H = w1.shape
    A = w3.shape[1]
    assert H <= _LANE and A <= _LANE, "hidden/action dims must fit one lane tile"

    bias_row1 = _round_up(F, 8)
    slab1 = jnp.zeros((bias_row1 + _BIAS_PAD_ROWS, _LANE), dtype)
    slab1 = slab1.at[:F, :H].set(w1.astype(dtype))
    slab1 = slab1.at[bias_row1, :H].set(b1.astype(dtype))

    slab23 = jnp.zeros((2, _LANE + _BIAS_PAD_ROWS, _LANE), dtype)
    slab23 = slab23.at[0, :H, :H].set(w2.astype(dtype))
    slab23 = slab23.at[0, _LANE, :H].set(b2.astype(dtype))
    slab23 = slab23.at[1, :H, :A].set(w3.astype(dtype))
    slab23 = slab23.at[1, _LANE, :A].set(b3.astype(dtype))
    return slab1, slab23


# ----------------------------------------------------------------------------
# Wrapper
# ----------------------------------------------------------------------------
def _pick_batch_tile(batch, f, itemsize, max_tile=1024):
    b8 = _round_up(batch, 8)
    if b8 < 16:
        return b8
    # At least 2 grid steps so the "parallel" batch axis can shard across
    # v7x's two TensorCores; big tiles amortize the ~0.35us/step overhead.
    tb = min(max_tile, _round_up(pl.cdiv(b8, 2), 8))
    # VMEM budget per step: double-buffered x tile + double-buffered f32 out.
    per_row = 2 * itemsize * f + 2 * 4 * _LANE
    budget_rows = (24 * 1024 * 1024) // max(per_row, 1)
    tb = min(tb, max(8, (budget_rows // 8) * 8))
    return max(8, tb)


def dqn_forward(x, slab1, slab23, nr_actions, *, max_batch_tile=1024):
    """x: (B, ...) observations; slab1/slab23: packed params from pack_params().
    Returns (B, nr_actions) Q-values (float32)."""
    B = x.shape[0]
    dtype = slab1.dtype
    x2d = x.reshape(B, -1)
    if x2d.dtype != dtype:
        x2d = x2d.astype(dtype)
    F = x2d.shape[1]
    itemsize = jnp.dtype(dtype).itemsize

    bias_row1 = slab1.shape[0] - _BIAS_PAD_ROWS     # == round_up(F, 8)
    hpad = slab23.shape[1] - _BIAS_PAD_ROWS         # == 128

    tb = _pick_batch_tile(B, F, itemsize, max_batch_tile)
    b_pad = _round_up(B, tb)
    if b_pad != B:
        # Only pad the batch dim, and only when necessary (single fused op).
        x2d = jnp.pad(x2d, ((0, b_pad - B), (0, 0)))
    grid = (b_pad // tb,)

    # Advisory cost for XLA scheduling.
    flops = 2 * b_pad * (bias_row1 * _LANE + hpad * _LANE + hpad * _LANE)
    bytes_accessed = (b_pad * F * itemsize
                      + (int(slab1.size) + int(slab23.size)) * itemsize
                      + b_pad * _LANE * 4)
    cost = pl.CostEstimate(flops=flops, transcendentals=0,
                           bytes_accessed=bytes_accessed)

    # Real VMEM footprint: double-buffered x & out tiles + both (resident) slabs.
    vmem_need = (2 * tb * F * itemsize
                 + 2 * tb * _LANE * 4
                 + 2 * (int(slab1.size) + int(slab23.size)) * itemsize)
    vmem_limit = int(max(32 * 1024 * 1024, min(100 * 1024 * 1024, 2 * vmem_need)))

    kernel = functools.partial(_dqn_kernel, bias_row1=bias_row1, hpad=hpad)

    out_p = pl.pallas_call(
        kernel,
        out_shape=jax.ShapeDtypeStruct((b_pad, _LANE), jnp.float32),
        grid=grid,
        in_specs=[
            # batch-tiled activations; last dim = full extent F (no lane pad)
            pl.BlockSpec((tb, F), lambda i: (i, 0)),
            # compact layer-1 slab, VMEM-resident across all grid steps
            pl.BlockSpec(slab1.shape, lambda i: (0, 0)),
            # compact layer-2/3 slab, VMEM-resident across all grid steps
            pl.BlockSpec(slab23.shape, lambda i: (0, 0, 0)),
        ],
        out_specs=pl.BlockSpec((tb, _LANE), lambda i: (i, 0)),
        compiler_params=pltpu.CompilerParams(
            dimension_semantics=("parallel",),
            vmem_limit_bytes=vmem_limit,
        ),
        cost_estimate=cost,
    )(x2d, slab1, slab23)

    # Strip batch / lane padding outside the kernel (keeps the store lane-dense).
    return out_p[:B, :nr_actions]


# ----------------------------------------------------------------------------
# Pure-JAX reference (f32)
# ----------------------------------------------------------------------------
def dqn_reference(x, params):
    w1, b1, w2, b2, w3, b3 = params
    x2d = x.reshape(x.shape[0], -1)
    h1 = jnp.maximum(x2d @ w1 + b1, 0.0)
    h2 = jnp.maximum(h1 @ w2 + b2, 0.0)
    return h2 @ w3 + b3


if __name__ == "__main__":
    key = jax.random.PRNGKey(0)
    k_x, k_p = jax.random.split(key)

    # Observations flattened from (C=4, H=2, W=2) -> 16 features; batch = 64
    # (two grid steps -> exercises batch tiling / megacore path), 4 actions.
    batch = 64
    nr_input_features = 16
    nr_actions = 4

    x = jax.random.normal(k_x, (batch, 4, 2, 2), dtype=jnp.float32)
    params = init_params(k_p, nr_input_features, nr_actions)
    slab1, slab23 = pack_params(params)          # bf16 weights, f32 accumulate

    out = dqn_forward(x, slab1, slab23, nr_actions)
    out = jax.block_until_ready(out)

    ref = dqn_reference(x, params)
    assert out.shape == (batch, nr_actions)
    # bf16 weights/activations with f32 accumulation -> slightly looser tol.
    assert jnp.allclose(out, ref, atol=2e-2, rtol=2e-2)

    print("KERNEL_OK")
</pallas_src>

<mosaic_0001>
module attributes {stable_mosaic.version = 11 : i64} {
  func.func @_dqn_kernel(%arg0: i32, %arg1: memref<32x16xbf16, #tpu.memory_space<vmem>>, %arg2: memref<24x128xbf16, #tpu.memory_space<vmem>>, %arg3: memref<2x136x128xbf16, #tpu.memory_space<vmem>>, %arg4: memref<32x128xf32, #tpu.memory_space<vmem>>) attributes {dimension_semantics = [#tpu.dimension_semantics<parallel>], iteration_bounds = array<i64: 2>, scalar_prefetch = 0 : i64, scratch_operands = 0 : i64, tpu.core_type = #tpu.core_type<tc>, window_params = [{transform_indices = @transform_0, window_bounds = array<i64: 32, 16>}, {pipeline_mode = #tpu.pipeline_mode<synchronous>, transform_indices = @transform_1, window_bounds = array<i64: 24, 128>}, {pipeline_mode = #tpu.pipeline_mode<synchronous>, transform_indices = @transform_2, window_bounds = array<i64: 2, 136, 128>}, {transform_indices = @transform_3, window_bounds = array<i64: 32, 128>}]} {
    %c0 = arith.constant 0 : index
    %c0_0 = arith.constant 0 : index
    %0 = vector.load %arg1[%c0, %c0_0] : memref<32x16xbf16, #tpu.memory_space<vmem>>, vector<32x16xbf16>
    %c0_1 = arith.constant 0 : index
    %c0_2 = arith.constant 0 : index
    %1 = vector.load %arg2[%c0_1, %c0_2] : memref<24x128xbf16, #tpu.memory_space<vmem>>, vector<16x128xbf16>
    %cst = arith.constant dense<0.000000e+00> : vector<32x128xf32>
    %2 = tpu.matmul %0, %1, %cst {dimension_numbers = #tpu.dot_dimension_numbers<[1], [0], [0], [1], [0, 0, 1, 1], [], []>} : vector<32x16xbf16>, vector<16x128xbf16>, vector<32x128xf32> -> vector<32x128xf32>
    %c16 = arith.constant 16 : index
    %c0_3 = arith.constant 0 : index
    %3 = vector.load %arg2[%c16, %c0_3] : memref<24x128xbf16, #tpu.memory_space<vmem>>, vector<1x128xbf16>
    %4 = arith.extf %3 : vector<1x128xbf16> to vector<1x128xf32>
    %5 = vector.broadcast %4 : vector<1x128xf32> to vector<32x128xf32>
    %6 = arith.addf %2, %5 : vector<32x128xf32>
    %cst_4 = arith.constant 0.000000e+00 : f32
    %7 = vector.broadcast %cst_4 : f32 to vector<32x128xf32>
    %8 = arith.maximumf %6, %7 : vector<32x128xf32>
    %9 = arith.truncf %8 : vector<32x128xf32> to vector<32x128xbf16>
    %c0_5 = arith.constant 0 : index
    %c0_6 = arith.constant 0 : index
    %c0_7 = arith.constant 0 : index
    %10 = vector.load %arg3[%c0_5, %c0_6, %c0_7] : memref<2x136x128xbf16, #tpu.memory_space<vmem>>, vector<1x128x128xbf16>
    %11 = vector.shape_cast %10 : vector<1x128x128xbf16> to vector<128x128xbf16>
    %cst_8 = arith.constant dense<0.000000e+00> : vector<32x128xf32>
    %12 = tpu.matmul %9, %11, %cst_8 {dimension_numbers = #tpu.dot_dimension_numbers<[1], [0], [0], [1], [0, 0, 1, 1], [], []>} : vector<32x128xbf16>, vector<128x128xbf16>, vector<32x128xf32> -> vector<32x128xf32>
    %c0_9 = arith.constant 0 : index
    %c128 = arith.constant 128 : index
    %c0_10 = arith.constant 0 : index
    %13 = vector.load %arg3[%c0_9, %c128, %c0_10] : memref<2x136x128xbf16, #tpu.memory_space<vmem>>, vector<1x1x128xbf16>
    %14 = vector.shape_cast %13 : vector<1x1x128xbf16> to vector<1x128xbf16>
    %15 = arith.extf %14 : vector<1x128xbf16> to vector<1x128xf32>
    %16 = vector.broadcast %15 : vector<1x128xf32> to vector<32x128xf32>
    %17 = arith.addf %12, %16 : vector<32x128xf32>
    %cst_11 = arith.constant 0.000000e+00 : f32
    %18 = vector.broadcast %cst_11 : f32 to vector<32x128xf32>
    %19 = arith.maximumf %17, %18 : vector<32x128xf32>
    %20 = arith.truncf %19 : vector<32x128xf32> to vector<32x128xbf16>
    %c1 = arith.constant 1 : index
    %c0_12 = arith.constant 0 : index
    %c0_13 = arith.constant 0 : index
    %21 = vector.load %arg3[%c1, %c0_12, %c0_13] : memref<2x136x128xbf16, #tpu.memory_space<vmem>>, vector<1x128x128xbf16>
    %22 = vector.shape_cast %21 : vector<1x128x128xbf16> to vector<128x128xbf16>
    %cst_14 = arith.constant dense<0.000000e+00> : vector<32x128xf32>
    %23 = tpu.matmul %20, %22, %cst_14 {dimension_numbers = #tpu.dot_dimension_numbers<[1], [0], [0], [1], [0, 0, 1, 1], [], []>} : vector<32x128xbf16>, vector<128x128xbf16>, vector<32x128xf32> -> vector<32x128xf32>
    %c1_15 = arith.constant 1 : index
    %c128_16 = arith.constant 128 : index
    %c0_17 = arith.constant 0 : index
    %24 = vector.load %arg3[%c1_15, %c128_16, %c0_17] : memref<2x136x128xbf16, #tpu.memory_space<vmem>>, vector<1x1x128xbf16>
    %25 = vector.shape_cast %24 : vector<1x1x128xbf16> to vector<1x128xbf16>
    %26 = arith.extf %25 : vector<1x128xbf16> to vector<1x128xf32>
    %27 = vector.broadcast %26 : vector<1x128xf32> to vector<32x128xf32>
    %28 = arith.addf %23, %27 : vector<32x128xf32>
    %c0_18 = arith.constant 0 : index
    %c0_19 = arith.constant 0 : index
    %29 = vector.load %arg4[%c0_18, %c0_19] : memref<32x128xf32, #tpu.memory_space<vmem>>, vector<32x128xf32>
    tpu.vector_store %arg4[%c0_18, %c0_19], %28 {strides = array<i32>} : memref<32x128xf32, #tpu.memory_space<vmem>>, vector<32x128xf32>,
    return
  }
  func.func @transform_0(%arg0: i32) -> (i32, i32) {
    %c0_i32 = arith.constant 0 : i32
    %c0_i32_0 = arith.constant 0 : i32
    return %arg0, %c0_i32 : i32, i32
  }
  func.func @transform_1(%arg0: i32) -> (i32, i32) {
    %c0_i32 = arith.constant 0 : i32
    %c0_i32_0 = arith.constant 0 : i32
    %c0_i32_1 = arith.constant 0 : i32
    return %c0_i32, %c0_i32_0 : i32, i32
  }
  func.func @transform_2(%arg0: i32) -> (i32, i32, i32) {
    %c0_i32 = arith.constant 0 : i32
    %c0_i32_0 = arith.constant 0 : i32
    %c0_i32_1 = arith.constant 0 : i32
    %c0_i32_2 = arith.constant 0 : i32
    return %c0_i32, %c0_i32_0, %c0_i32_1 : i32, i32, i32
  }
  func.func @transform_3(%arg0: i32) -> (i32, i32) {
    %c0_i32 = arith.constant 0 : i32
    %c0_i32_0 = arith.constant 0 : i32
    return %arg0, %c0_i32 : i32, i32
  }
}

</mosaic_0001>

<bundles_post_ra>
// kernel: tpu_custom_call.1
= control target key start
LH: loop header
LB: loop body
LE: loop exit
PB: predicated region body
PF: predicated region fallthrough
CT: control target
= control target key end

     0   :  { %8 = vsyncpa [#allocation3], 0  ;;  %s1058_s0 = inlined_call_operand.vmem [shape: bf16[64,16], index: 0, kind: input, shape index: {}]   ;;  %s1059_s1 = inlined_call_operand.vmem [shape: bf16[24,128], index: 1, kind: input, shape index: {}]   ;;  %s1060_s2 = inlined_call_operand.hbm [shape: bf16[2,136,128], index: 2, kind: input, shape index: {}]   ;;  %s1061_s3 = inlined_call_operand.hbm [shape: f32[64,128], index: 3, kind: output, shape index: {}]  }
   0x1   :  { %9 = vsyncpa [#allocation4], 0 }
   0x2   :  { %11 = vsyncpa [#allocation4 + $0x1], 0  ;;  %s915_s12 = smov 0   ;;  %s917_s13 = smov 0  }
   0x3   :  { %s919_s14 = smov 0   ;;  %s921_s15 = smov 0  }
   0x4 LB: > { %s936_s16 = sadd.s32 4294967295, %s887_s15   ;;  %s615_s17 = sadd.s32 4294967294, %s887_s15   ;;  %s887_s15 = sphi %s921_s15, %s1077_s15   ;;  %s883_s14 = sphi %s919_s14, %s1076_s14   ;;  %s879_s13 = sphi %s917_s13, %s1075_s13   ;;  %s875_s12 = sphi %s915_s12, %s1074_s12  }
   0x5   : > { %s940_s18 = sadd.s32 1, %s887_s15   ;;  %s92_s19 = sadd.s32 1, %s883_s14 }
   0x6   : > { %s89_s20 = ssub.s32 %s887_s15, %s940_s18  ;;  %p102_p0 = scmp.ne.s32.totalorder %s883_s14, %s879_s13 }
   0x7   : > { %p90_p1 = scmp.eq.s32.totalorder %s89_s20, 0  ;;  %p103_p2 = scmp.eq.s32.totalorder %s936_s16, 1 }
   0x8   : > { %p108_p3 = scmp.ne.s32.totalorder %s879_s13, %s875_s12  ;;  %p109_p4 = scmp.eq.s32.totalorder %s615_s17, 1 }
   0x9   : > { %s951_s21 = scalar_select %p90_p1, %s883_s14, %s92_s19  }
   0xa   : > { %p953_p5 = por %p103_p2, %p102_p0  ;;  %p957_p6 = por %p109_p4, %p108_p3 }
   0xb   : > { %p616_p7 = scmp.ge.s32.totalorder %s887_s15, 1  ;;  %p116_p8 = scmp.lt.s32.totalorder %s887_s15, 3 }
   0xc   : > { %s1065_s22 = scalar_select %p953_p5, 1, 0 }
   0xd   : > { %s1066_s23 = scalar_select %p957_p6, 1, 0 }
   0xe   : > { %p1062_p9 = scmp.eq.s32.totalorder %s936_s16, 0  ;;  %p964_p10 = pnand %p616_p7, %p116_p8 }
   0xf   : > { %s889_s25 = smov [#allocation2]   ;;  %s793_s30 = scalar_lea.hbm %s1060_s2, 2176 }
  0x10   : > { %s1067_s24 = scalar_select %p964_p10, 1, 0 }
  0x11   : > { %s131_s26 = sshll.u32 %s889_s25, 4  ;;  %p726_p11 = pneg %p964_p10  ;;  %s132_s26 = int_to_ptr.vmem [resolvable:$true] %s131_s26 }
  0x12   : > { %p794_p13 = scmp.ne.s32.totalorder %s1060_s2, %s793_s30  ;;  %p800_p3 = scmp.lt.u32.totalorder %s793_s30, %s1060_s2 }
  0x13   : > { %p972_p12 = pnand %p1062_p9, %p726_p11 }
  0x15   : > { %p795_p0 = pneg %p972_p12 }
  0x17   : > { %p796_p1 = pnand %p795_p0, %p794_p13 }
  0x19   : > { %p797_p2 = pneg %p796_p1 }
  0x1b   : > { %p802_p4 = pnand %p800_p3, %p797_p2 }
  0x1d   : > { %805 = shalt.err (!%p802_p4)
}
  0x1e   : > { %s806_s8 = scalar_lea.vmem %s132_s26, 2176  ;;  %p814_p9 = scmp.lt.s32.totalorder %s132_s26, %s132_s26 }
  0x1f   : > { %p807_p7 = scmp.ne.s32.totalorder %s132_s26, %s806_s8  ;;  %p815_p6 = scmp.lt.s32.totalorder %s806_s8, %s806_s8 }
  0x21   : > { %p809_p8 = pnand %p807_p7, %p795_p0  ;;  %p816_p5 = por %p815_p6, %p814_p9 }
  0x23   : > { %p810_p11 = pneg %p809_p8 }
  0x25   : > { %p817_p10 = pnand %p816_p5, %p810_p11 }
  0x27   : > { %820 = shalt.err (!%p817_p10)
}
  0x28   : > { %s890_s9 = smov 64   ;;  %s891_s10 = smov 4  }
  0x29   : > { %729 = dma.hbm_to_vmem [thread:$0]  (!%p972_p12), %s1060_s2, 2176, %s132_s26, [#allocation3], %s890_s9, %s890_s9, %s891_s10  }
  0x2a   : > { %p1069_p13 = scmp.ne.s32.totalorder %s1067_s24, 0 }
  0x2b   : > { %p1070_p1 = scmp.eq.s32.totalorder (!%p1069_p13), %s936_s16, 0 }
  0x2c   : > { %156 = sbr.rel (%p1069_p13) target bundleno = 736 (0x2e0), region = 32 }
  0x33   : > { %866 = dma.done.wait (%p1070_p1), [#allocation3], 2176   ;;  %p1071_p0 = pmov %p1070_p1 }
  0x34   : > { %s622_s19 = sshll.u32 %s936_s16, 2  ;;  %v774_v0 = vld [vmem:[%s1059_s1] sm:$0xff]   ;;  %vm216_vm0 = vcmask 130048   ;;  %v777_v3 = vld [vmem:[#allocation2] sm:$0xff]   ;;  %v778_v4 = vld [vmem:[#allocation2 + $0x8] sm:$0xff]   ;;  %v196_v17 = vlaneseq  ;;  %s177_s4 = sand.u32 1, %s879_s13  }
  0x35   : > { %868 = vsyncadd (%p1071_p0), [#allocation3], 4294965120  ;;  %p181_p5 = scmp.lt.s32.totalorder %s622_s19, 7  ;;  %674 = vmatprep.subr.bf16.mxu0 %v774_v0  ;;  %680 = vmatprep.subr.bf16.mxu1 %v777_v3  ;;  %v779_v5 = vld [vmem:[#allocation2 + $0x10] sm:$0xff]   ;;  %v780_v6 = vld [vmem:[#allocation2 + $0x18] sm:$0xff]   ;;  %s621_s5 = sshll.u32 %s177_s4, 5 }
  0x36   : > { %675 = vmatpush3.bf16.msra.mxu0 %v774_v0  ;;  %681 = vmatpush3.bf16.msra.mxu1 %v777_v3  ;;  %v781_v7 = vld [vmem:[#allocation2 + $0x20] sm:$0xff]   ;;  %v782_v8 = vld [vmem:[#allocation2 + $0x28] sm:$0xff]   ;;  %v783_v9 = vld [vmem:[#allocation2 + $0x30] sm:$0xff]   ;;  %v197_v18 = vshrl.u32 %v196_v17, 7  ;;  %s179_s6 = scalar_lea.vmem [#allocation5], %s621_s5  ;;  %s650_s8 = sshll.u32 %s936_s16, 9 }
  0x37   : > { %s1079_s19 = smov (!%p181_p5, %s622_s19), 7  ;;  %682 = vmatprep.subr.bf16.mxu1 %v778_v4  ;;  %v784_v10 = vld [vmem:[#allocation2 + $0x38] sm:$0xff]   ;;  %v785_v11 = vld [vmem:[#allocation2 + $0x44] sm:$0xff]   ;;  %v786_v12 = vld [vmem:[#allocation2 + $0x4c] sm:$0xff]   ;;  %s541_s7 = sshll.u32 %s179_s6, 4  ;;  %s1010_s7 = int_to_ptr.vmem [resolvable:$true] %s541_s7 }
  0x38   : > { %s623_s20 = sshll.u32 %s1079_s19, 2  ;;  %700 = vmatprep.subr.bf16.mxu0 %v785_v11  ;;  %v787_v13 = vld [vmem:[#allocation2 + $0x54] sm:$0xff]   ;;  %v788_v14 = vld [vmem:[#allocation2 + $0x5c] sm:$0xff]   ;;  %v789_v15 = vld [vmem:[#allocation2 + $0x64] sm:$0xff]   ;;  %v198_v21 = vsub.s32 0, %v197_v18  ;;  %s1015_s11 = scalar_lea.hbm %s1061_s3, %s650_s8 }
  0x39   : > { %s184_s28 = scalar_lea.vmem %s1058_s0, %s623_s20  ;;  %v790_v16 = vld [vmem:[#allocation2 + $0x6c] sm:$0xff]   ;;  %v194_v19 = vld [vmem:[%s1059_s1 + $0x8] sm:$0x1]  ;;  %v792_v38 = vld [vmem:[#allocation2 + $0x7c] sm:$0xff]   ;;  %s1017_s16 = scalar_lea.sflag [#allocation4], %s177_s4 }
  0x3a   : > { %v775_v1 = vld [vmem:[%s184_s28] sm:$0xff]   ;;  %v776_v2 = vld [vmem:[%s184_s28 + $0x8] sm:$0xff]   ;;  %683 = vmatpush3.bf16.msra.mxu1 %v778_v4  ;;  %v195_v20 = vunpack.c.l.bf16 %v194_v19  ;;  %v294_v39 = vld [vmem:[#allocation2 + $0x40] sm:$0x1]  ;;  %s821_s17 = scalar_lea.vmem %s1010_s7, 512  ;;  %p1072_p9 = scmp.ne.s32.totalorder %s1065_s22, 0 }
  0x3b   : > { %676 = vmatprep.mubr.msk.bf16.mxu0 %vm216_vm0, %v775_v1  ;;  %684 = vmatprep.subr.bf16.mxu1 %v779_v5  ;;  %v791_v37 = vld [vmem:[#allocation2 + $0x74] sm:$0xff]   ;;  %v295_v40 = vunpack.c.l.bf16 %v294_v39  ;;  %v420_v56 = vld [vmem:[#allocation2 + $0x84] sm:$0x1]  ;;  %p822_p6 = scmp.ne.s32.totalorder %s1010_s7, %s821_s17  ;;  %s892_s19 = smov [#allocation5]  }
  0x3c   : > { %677 = vmatmul.mubr.msk.bf16.vlgmr.msra.gmra.mrb[0].mxu0 %vm216_vm0, %v776_v2  ;;  %v199_v22 = vrot.slane %v195_v20, %v198_v21  ;;  %v421_v57 = vunpack.c.l.bf16 %v420_v56  ;;  %s825_s20 = sshll.u32 %s892_s19, 4  ;;  %s826_s20 = int_to_ptr.vmem [resolvable:$false] %s825_s20 }
  0x3d   : > { %701 = vmatpush3.bf16.msra.mxu0 %v785_v11  ;;  %v299_v41 = vrot.slane %v295_v40, %v198_v21  ;;  %p823_p10 = pnand %p822_p6, %p1072_p9  ;;  %s827_s25 = scalar_lea.vmem %s826_s20, 1024 }
  0x3e   : > { %685 = vmatpush3.bf16.msra.mxu1 %v779_v5  ;;  %702 = vmatprep.subr.bf16.mxu0 %v786_v12  ;;  %v425_v58 = vrot.slane %v421_v57, %v198_v21  ;;  %p828_p2 = scmp.lt.s32.totalorder %s1010_s7, %s826_s20  ;;  %p829_p3 = scmp.lt.s32.totalorder %s827_s25, %s821_s17 }
  0x3f   : > { %686 = vmatprep.subr.bf16.mxu1 %v780_v6  ;;  %p824_p12 = pneg %p823_p10 }
  0x40   : > { %p830_p4 = por %p829_p3, %p828_p2 }
  0x41   : > { %703 = vmatpush3.bf16.msra.mxu0 %v786_v12 }
  0x42   : > { %687 = vmatpush3.bf16.msra.mxu1 %v780_v6  ;;  %704 = vmatprep.subr.bf16.mxu0 %v787_v13  ;;  %p831_p7 = pnand %p830_p4, %p824_p12 }
  0x43   : > { %688 = vmatprep.subr.bf16.mxu1 %v781_v7 }
  0x45   : > { %705 = vmatpush3.bf16.msra.mxu0 %v787_v13 }
  0x46   : > { %689 = vmatpush3.bf16.msra.mxu1 %v781_v7  ;;  %706 = vmatprep.subr.bf16.mxu0 %v788_v14 }
  0x47   : > { %690 = vmatprep.subr.bf16.mxu1 %v782_v8 }
  0x49   : > { %707 = vmatpush3.bf16.msra.mxu0 %v788_v14 }
  0x4a   : > { %691 = vmatpush3.bf16.msra.mxu1 %v782_v8  ;;  %708 = vmatprep.subr.bf16.mxu0 %v789_v15 }
  0x4b   : > { %692 = vmatprep.subr.bf16.mxu1 %v783_v9 }
  0x4d   : > { %709 = vmatpush3.bf16.msra.mxu0 %v789_v15 }
  0x4e   : > { %693 = vmatpush3.bf16.msra.mxu1 %v783_v9  ;;  %710 = vmatprep.subr.bf16.mxu0 %v790_v16 }
  0x4f   : > { %694 = vmatprep.subr.bf16.mxu1 %v784_v10 }
  0x51   : > { %711 = vmatpush3.bf16.msra.mxu0 %v790_v16 }
  0x52   : > { %695 = vmatpush3.bf16.msra.mxu1 %v784_v10  ;;  %712 = vmatprep.subr.bf16.mxu0 %v791_v37 }
  0x55   : > { %713 = vmatpush3.bf16.msra.mxu0 %v791_v37 }
  0x56   : > { %714 = vmatprep.subr.bf16.mxu0 %v792_v38 }
  0x59   : > { %715 = vmatpush3.bf16.msra.mxu0 %v792_v38 }
 0x10f   : > { %v678_v23 = vpop.f32.mrb[0].mxu0 }
 0x110   : > { %v266_v24 = vadd.f32 %v678_v23, %v199_v22  ;;  %v257_v25 = vpop.f32.mrb[1].mxu0 }
 0x111   : > { %v258_v26 = vadd.f32 %v257_v25, %v199_v22  ;;  %v679_v27 = vpop.f32.mrb[2].mxu0 }
 0x112   : > { %v269_v28 = vadd.f32 %v679_v27, %v199_v22  ;;  %v260_v29 = vpop.f32.mrb[3].mxu0  ;;  %v274_v31 = vmax.f32 %v266_v24, 0.0 }
 0x113   : > { %v261_v30 = vadd.f32 %v260_v29, %v199_v22  ;;  %v272_v33 = vmax.f32 %v258_v26, 0.0 }
 0x114   : > { %v275_v32 = vmax.f32 %v269_v28, 0.0 }
 0x115   : > { %v273_v34 = vmax.f32 %v261_v30, 0.0 }
 0x116   : > { %v277_v35 = vpack.c.bf16 %v275_v32, %v274_v31 }
 0x117   : > { %v276_v36 = vpack.c.bf16 %v273_v34, %v272_v33 }
 0x119   : > { %696 = vmatprep.mubr.bf16.mxu1 %v276_v36 }
 0x11a   : > { %697 = vmatmul.mubr.bf16.vlgmr.msra.gmra.mrb[0].mxu1 %v277_v35 }
 0x1ed   : > { %v698_v42 = vpop.f32.mrb[0].mxu1 }
 0x1ee   : > { %v391_v43 = vadd.f32 %v698_v42, %v299_v41  ;;  %v382_v44 = vpop.f32.mrb[1].mxu1 }
 0x1ef   : > { %v383_v45 = vadd.f32 %v382_v44, %v299_v41  ;;  %v699_v46 = vpop.f32.mrb[2].mxu1 }
 0x1f0   : > { %v394_v47 = vadd.f32 %v699_v46, %v299_v41  ;;  %v385_v48 = vpop.f32.mrb[3].mxu1  ;;  %v399_v50 = vmax.f32 %v391_v43, 0.0 }
 0x1f1   : > { %v386_v49 = vadd.f32 %v385_v48, %v299_v41  ;;  %v397_v52 = vmax.f32 %v383_v45, 0.0 }
 0x1f2   : > { %v400_v51 = vmax.f32 %v394_v47, 0.0 }
 0x1f3   : > { %v398_v53 = vmax.f32 %v386_v49, 0.0 }
 0x1f4   : > { %v402_v54 = vpack.c.bf16 %v400_v51, %v399_v50 }
 0x1f5   : > { %v401_v55 = vpack.c.bf16 %v398_v53, %v397_v52 }
 0x1f7   : > { %716 = vmatprep.mubr.bf16.mxu0 %v401_v55 }
 0x1f8   : > { %717 = vmatmul.mubr.bf16.vlgmr.msra.gmra.mrb[4].mxu0 %v402_v54 }
 0x2cb   : > { %v718_v59 = vpop.f32.mrb[4].mxu0 }
 0x2cc   : > { %v517_v60 = vadd.f32 %v718_v59, %v425_v58  ;;  %v508_v61 = vpop.f32.mrb[5].mxu0 }
 0x2cd   : > { %v509_v62 = vadd.f32 %v508_v61, %v425_v58  ;;  %v719_v63 = vpop.f32.mrb[6].mxu0 }
 0x2ce   : > { %525 = vst [vmem:[%s179_s6 + $0x10] sm:$0xff] %v517_v60  ;;  %v520_v0 = vadd.f32 %v719_v63, %v425_v58  ;;  %v511_v1 = vpop.f32.mrb[7].mxu0 }
 0x2cf   : > { %523 = vst [vmem:[%s179_s6] sm:$0xff] %v509_v62  ;;  %v512_v2 = vadd.f32 %v511_v1, %v425_v58 }
 0x2d0   : > { %526 = vst [vmem:[%s179_s6 + $0x18] sm:$0xff] %v520_v0 }
 0x2d1   : > { %524 = vst [vmem:[%s179_s6 + $0x8] sm:$0xff] %v512_v2 }
 0x2d2   : > { %834 = shalt.err (!%p831_p7)
}
 0x2d3   : > { %s835_s27 = scalar_lea.hbm %s1015_s11, 512  ;;  %s839_s26 = scalar_lea.hbm %s1061_s3, 1024 }
 0x2d4   : > { %p836_p8 = scmp.ne.s32.totalorder %s1015_s11, %s835_s27  ;;  %p840_p1 = scmp.lt.u32.totalorder %s1015_s11, %s1061_s3 }
 0x2d5   : > { %p841_p0 = scmp.lt.u32.totalorder %s839_s26, %s835_s27  ;;  %p843_p6 = scmp.lt.u32.totalorder %s835_s27, %s1015_s11 }
 0x2d6   : > { %p837_p11 = pnand %p836_p8, %p1072_p9 }
 0x2d7   : > { %p842_p5 = por %p841_p0, %p840_p1 }
 0x2d8   : > { %p838_p13 = pneg %p837_p11 }
 0x2d9   : > { %p844_p10 = por %p843_p6, %p842_p5 }
 0x2db   : > { %p845_p12 = pnand %p844_p10, %p838_p13 }
 0x2dd   : > { %848 = shalt.err (!%p845_p12)
}
 0x2de   : > { %s893_s4 = smov 128   ;;  %s894_s5 = smov 8  }
 0x2df   : > { %724 = dma.vmem_to_hbm [thread:$0]  (%p1072_p9), %s1010_s7, 512, %s1015_s11, %s1017_s16, %s893_s4, %s893_s4, %s894_s5  }
 0x2e0 PF: > { %p736_p2 = scmp.ge.s32.totalorder %s887_s15, 2  ;;  %s556_s6 = sand.u32 1, %s875_s12  }
 0x2e1   : > { %p1073_p3 = scmp.ne.s32.totalorder %s1066_s23, 0  ;;  %s557_s8 = scalar_lea.sflag [#allocation4], %s556_s6 }
 0x2e3   : > { %p731_p4 = pnand %p736_p2, %p1073_p3 }
 0x2e5   : > { %870 = dma.done.wait (!%p731_p4), %s557_s8, 512  }
 0x2e6   : > { %872 = vsyncadd (!%p731_p4), %s557_s8, 4294966784  ;;  %p14_p7 = scmp.ge.s32.totalorder %s940_s18, 4   ;;  %s1074_s12 = smov %s879_s13 }
 0x2e7   : > { %s1075_s13 = smov %s883_s14  ;;  %s1076_s14 = smov %s951_s21 }
 0x2e8   : > { %s1077_s15 = smov %s940_s18  ;;  %16 = sbr.rel (!%p14_p7) target bundleno = 4 (0x4), region = 73 }
 0x2ef   :  { %562 = vsyncpa [#allocation3], 1 }
 0x2f0   :  { %564 = vsyncpa [#allocation3 + $0x1], 1 }
 0x2f1   :  { %565 = vsyncpa [#allocation4], 1 }
 0x2f2   :  { %567 = vsyncpa [#allocation4 + $0x1], 1 }

</bundles_post_ra>
